<compile_context>
chip_gen: v6e
topology: v6e:2x2x1
jax: 0.10.0
libtpu: 0.0.40
codegen_flags: <defaults>
</compile_context>

<pallas_src>
import functools

import jax
import jax.numpy as jnp
from jax.experimental import pallas as pl
from jax.experimental.pallas import tpu as pltpu


def _round_up(x, m):
    return ((x + m - 1) // m) * m


def _decoder_kernel(num_hidden, use_dropout, x_ref, *refs):
    """Fused MLP forward for one batch tile.

    refs layout:
      [mask_0, ..., mask_{H-1}]            (only when use_dropout)
      [W0, b0, W1, b1, ..., W_out, b_out]  (weights bf16, biases f32)
      out_ref
    """
    out_ref = refs[-1]
    if use_dropout:
        mask_refs = refs[:num_hidden]
        param_refs = refs[num_hidden:-1]
    else:
        mask_refs = ()
        param_refs = refs[:-1]

    # bf16 MXU operands, f32 accumulation; VPU math (bias, mask) stays f32.
    h = x_ref[...].astype(jnp.bfloat16)
    for li in range(num_hidden):
        w = param_refs[2 * li][...]            # (in_pad, out_pad) bf16
        b = param_refs[2 * li + 1][...]        # (1, out_pad) f32, loaded before the dot
        acc = jnp.dot(h, w, preferred_element_type=jnp.float32) + b
        if use_dropout:
            # mask already contains {0, 1/(1-p)} -> single multiply.
            acc = acc * mask_refs[li][...]
        h = acc.astype(jnp.bfloat16)

    w_out = param_refs[-2][...]
    b_out = param_refs[-1][...]
    out = jnp.dot(h, w_out, preferred_element_type=jnp.float32) + b_out
    out_ref[...] = out.astype(out_ref.dtype)


def decoder_forward(x, params, keep_prob, rng_key=None, block_batch=256):
    """Forward pass matching Decoder.forward.

    x: (batch, embed_dim) f32.
    params: list of (W, b); W is (in, out) (transpose of nn.Linear), b is (1, out).
            The last pair is the output layer.
    keep_prob: DROP probability passed to F.dropout (module naming quirk).
    """
    assert 0.0 <= keep_prob < 1.0, "keep_prob (drop probability) must be in [0, 1)"
    num_hidden = len(params) - 1
    batch, embed_dim = x.shape
    feat_dim = params[-1][0].shape[1]
    use_dropout = keep_prob > 0.0
    if use_dropout and rng_key is None:
        rng_key = jax.random.PRNGKey(0)

    LANE = 128
    dims = [embed_dim] + [W.shape[1] for (W, _) in params]
    dims_pad = [_round_up(d, LANE) for d in dims]

    # Batch tiling: sublane-pad, then tile into blocks of `block_batch` rows.
    batch_pad = _round_up(batch, 8)
    if batch_pad > block_batch:
        batch_pad = _round_up(batch, block_batch)
        tb = block_batch
    else:
        tb = batch_pad
    grid = (batch_pad // tb,)

    # Zero-padded input (extra rows/cols contribute exact zeros downstream).
    x_p = jnp.zeros((batch_pad, dims_pad[0]), jnp.float32).at[:batch, :embed_dim].set(x)

    flat_inputs = [x_p]
    in_specs = [pl.BlockSpec((tb, dims_pad[0]), lambda i: (i, 0))]

    # Host-generated dropout masks: {0, 1/(1-p)}, one per hidden layer.
    if use_dropout:
        scale = 1.0 / (1.0 - keep_prob)
        keys = jax.random.split(rng_key, num_hidden)
        for li in range(num_hidden):
            keep = jax.random.uniform(keys[li], (batch_pad, dims_pad[li + 1])) >= keep_prob
            mask = keep.astype(jnp.float32) * jnp.float32(scale)
            flat_inputs.append(mask)
            in_specs.append(pl.BlockSpec((tb, dims_pad[li + 1]), lambda i: (i, 0)))

    # Zero-padded parameters; weights bf16 (MXU operands), biases f32.
    for li, (W, b) in enumerate(params):
        in_p, out_p = dims_pad[li], dims_pad[li + 1]
        W_p = jnp.zeros((in_p, out_p), jnp.bfloat16)
        W_p = W_p.at[: W.shape[0], : W.shape[1]].set(W.astype(jnp.bfloat16))
        b_p = jnp.zeros((1, out_p), jnp.float32)
        b_p = b_p.at[0, : b.shape[-1]].set(b.reshape(-1).astype(jnp.float32))
        flat_inputs.append(W_p)
        in_specs.append(pl.BlockSpec((in_p, out_p), lambda i: (0, 0)))  # VMEM-resident
        flat_inputs.append(b_p)
        in_specs.append(pl.BlockSpec((1, out_p), lambda i: (0, 0)))

    kernel = functools.partial(_decoder_kernel, num_hidden, use_dropout)
    out_p = pl.pallas_call(
        kernel,
        out_shape=jax.ShapeDtypeStruct((batch_pad, dims_pad[-1]), jnp.float32),
        grid=grid,
        in_specs=in_specs,
        out_specs=pl.BlockSpec((tb, dims_pad[-1]), lambda i: (i, 0)),
        compiler_params=pltpu.CompilerParams(
            dimension_semantics=("parallel",)),   # megacore sharding on v7x
    )(*flat_inputs)
    return out_p[:batch, :feat_dim]


def init_decoder_params(key, embed_dim, decoder_hidden, feat_dim):
    """Parameter init mirroring the module's layer shapes (W stored as (in, out))."""
    dims = [embed_dim] + list(decoder_hidden) + [feat_dim]
    params = []
    for i in range(len(dims) - 1):
        key, kw, kb = jax.random.split(key, 3)
        bound = 1.0 / (dims[i] ** 0.5)
        W = jax.random.uniform(kw, (dims[i], dims[i + 1]), jnp.float32, -bound, bound)
        b = jax.random.uniform(kb, (1, dims[i + 1]), jnp.float32, -bound, bound)
        params.append((W, b))
    return params


def decoder_reference(x, params):
    """Pure-JAX reference with the same bf16-operand / f32-accumulate strategy."""
    h = x.astype(jnp.bfloat16)
    for (W, b) in params[:-1]:
        acc = jnp.dot(h, W.astype(jnp.bfloat16), preferred_element_type=jnp.float32) + b
        h = acc.astype(jnp.bfloat16)
    W_out, b_out = params[-1]
    return jnp.dot(h, W_out.astype(jnp.bfloat16),
                   preferred_element_type=jnp.float32) + b_out


if __name__ == "__main__":
    # Small shapes consistent with the module's forward.
    batch = 8
    embed_dim = 32
    decoder_hidden = (64, 64)
    feat_dim = 16
    keep_prob = 0.3  # F.dropout p -> DROP probability (module naming quirk)

    key = jax.random.PRNGKey(0)
    key, kx, kp, kd = jax.random.split(key, 4)
    x = jax.random.normal(kx, (batch, embed_dim), jnp.float32)
    params = init_decoder_params(kp, embed_dim, decoder_hidden, feat_dim)

    # 1) Dropout disabled: kernel must match the pure-JAX reference.
    out_nodrop = decoder_forward(x, params, keep_prob=0.0)
    jax.block_until_ready(out_nodrop)
    ref = decoder_reference(x, params)
    assert out_nodrop.shape == (batch, feat_dim)
    assert jnp.allclose(out_nodrop, ref, atol=1e-3, rtol=1e-3), "mismatch vs reference"

    # 2) Dropout active. PyTorch's dropout RNG stream cannot be bit-matched;
    #    semantics (drop prob = keep_prob, survivors scaled by 1/(1-p)) are kept.
    out = decoder_forward(x, params, keep_prob=keep_prob, rng_key=kd)
    jax.block_until_ready(out)
    assert out.shape == (batch, feat_dim)
    assert jnp.all(jnp.isfinite(out))

    print("KERNEL_OK")
</pallas_src>

<mosaic_0001>
module attributes {stable_mosaic.version = 11 : i64} {
  func.func @_decoder_kernel(%arg0: i32, %arg1: memref<8x128xf32, #tpu.memory_space<vmem>>, %arg2: memref<128x128xbf16, #tpu.memory_space<vmem>>, %arg3: memref<1x128xf32, #tpu.memory_space<vmem>>, %arg4: memref<128x128xbf16, #tpu.memory_space<vmem>>, %arg5: memref<1x128xf32, #tpu.memory_space<vmem>>, %arg6: memref<128x128xbf16, #tpu.memory_space<vmem>>, %arg7: memref<1x128xf32, #tpu.memory_space<vmem>>, %arg8: memref<8x128xf32, #tpu.memory_space<vmem>>) attributes {dimension_semantics = [#tpu.dimension_semantics<parallel>], iteration_bounds = array<i64: 1>, scalar_prefetch = 0 : i64, scratch_operands = 0 : i64, tpu.core_type = #tpu.core_type<tc>, window_params = [{transform_indices = @transform_0, window_bounds = array<i64: 8, 128>}, {pipeline_mode = #tpu.pipeline_mode<synchronous>, transform_indices = @transform_1, window_bounds = array<i64: 128, 128>}, {pipeline_mode = #tpu.pipeline_mode<synchronous>, transform_indices = @transform_2, window_bounds = array<i64: 1, 128>}, {pipeline_mode = #tpu.pipeline_mode<synchronous>, transform_indices = @transform_3, window_bounds = array<i64: 128, 128>}, {pipeline_mode = #tpu.pipeline_mode<synchronous>, transform_indices = @transform_4, window_bounds = array<i64: 1, 128>}, {pipeline_mode = #tpu.pipeline_mode<synchronous>, transform_indices = @transform_5, window_bounds = array<i64: 128, 128>}, {pipeline_mode = #tpu.pipeline_mode<synchronous>, transform_indices = @transform_6, window_bounds = array<i64: 1, 128>}, {transform_indices = @transform_7, window_bounds = array<i64: 8, 128>}]} {
    %c0 = arith.constant 0 : index
    %c0_0 = arith.constant 0 : index
    %0 = vector.load %arg1[%c0, %c0_0] : memref<8x128xf32, #tpu.memory_space<vmem>>, vector<8x128xf32>
    %1 = arith.truncf %0 : vector<8x128xf32> to vector<8x128xbf16>
    %c0_1 = arith.constant 0 : index
    %c0_2 = arith.constant 0 : index
    %2 = vector.load %arg2[%c0_1, %c0_2] : memref<128x128xbf16, #tpu.memory_space<vmem>>, vector<128x128xbf16>
    %c0_3 = arith.constant 0 : index
    %c0_4 = arith.constant 0 : index
    %3 = vector.load %arg3[%c0_3, %c0_4] : memref<1x128xf32, #tpu.memory_space<vmem>>, vector<1x128xf32>
    %cst = arith.constant dense<0.000000e+00> : vector<8x128xf32>
    %4 = tpu.matmul %1, %2, %cst {dimension_numbers = #tpu.dot_dimension_numbers<[1], [0], [0], [1], [0, 0, 1, 1], [], []>} : vector<8x128xbf16>, vector<128x128xbf16>, vector<8x128xf32> -> vector<8x128xf32>
    %5 = vector.broadcast %3 : vector<1x128xf32> to vector<8x128xf32>
    %6 = arith.addf %4, %5 : vector<8x128xf32>
    %7 = arith.truncf %6 : vector<8x128xf32> to vector<8x128xbf16>
    %c0_5 = arith.constant 0 : index
    %c0_6 = arith.constant 0 : index
    %8 = vector.load %arg4[%c0_5, %c0_6] : memref<128x128xbf16, #tpu.memory_space<vmem>>, vector<128x128xbf16>
    %c0_7 = arith.constant 0 : index
    %c0_8 = arith.constant 0 : index
    %9 = vector.load %arg5[%c0_7, %c0_8] : memref<1x128xf32, #tpu.memory_space<vmem>>, vector<1x128xf32>
    %cst_9 = arith.constant dense<0.000000e+00> : vector<8x128xf32>
    %10 = tpu.matmul %7, %8, %cst_9 {dimension_numbers = #tpu.dot_dimension_numbers<[1], [0], [0], [1], [0, 0, 1, 1], [], []>} : vector<8x128xbf16>, vector<128x128xbf16>, vector<8x128xf32> -> vector<8x128xf32>
    %11 = vector.broadcast %9 : vector<1x128xf32> to vector<8x128xf32>
    %12 = arith.addf %10, %11 : vector<8x128xf32>
    %13 = arith.truncf %12 : vector<8x128xf32> to vector<8x128xbf16>
    %c0_10 = arith.constant 0 : index
    %c0_11 = arith.constant 0 : index
    %14 = vector.load %arg6[%c0_10, %c0_11] : memref<128x128xbf16, #tpu.memory_space<vmem>>, vector<128x128xbf16>
    %c0_12 = arith.constant 0 : index
    %c0_13 = arith.constant 0 : index
    %15 = vector.load %arg7[%c0_12, %c0_13] : memref<1x128xf32, #tpu.memory_space<vmem>>, vector<1x128xf32>
    %cst_14 = arith.constant dense<0.000000e+00> : vector<8x128xf32>
    %16 = tpu.matmul %13, %14, %cst_14 {dimension_numbers = #tpu.dot_dimension_numbers<[1], [0], [0], [1], [0, 0, 1, 1], [], []>} : vector<8x128xbf16>, vector<128x128xbf16>, vector<8x128xf32> -> vector<8x128xf32>
    %17 = vector.broadcast %15 : vector<1x128xf32> to vector<8x128xf32>
    %18 = arith.addf %16, %17 : vector<8x128xf32>
    %c0_15 = arith.constant 0 : index
    %c0_16 = arith.constant 0 : index
    %19 = vector.load %arg8[%c0_15, %c0_16] : memref<8x128xf32, #tpu.memory_space<vmem>>, vector<8x128xf32>
    tpu.vector_store %arg8[%c0_15, %c0_16], %18 {strides = array<i32>} : memref<8x128xf32, #tpu.memory_space<vmem>>, vector<8x128xf32>,
    return
  }
  func.func @transform_0(%arg0: i32) -> (i32, i32) {
    %c0_i32 = arith.constant 0 : i32
    %c0_i32_0 = arith.constant 0 : i32
    return %arg0, %c0_i32 : i32, i32
  }
  func.func @transform_1(%arg0: i32) -> (i32, i32) {
    %c0_i32 = arith.constant 0 : i32
    %c0_i32_0 = arith.constant 0 : i32
    %c0_i32_1 = arith.constant 0 : i32
    return %c0_i32, %c0_i32_0 : i32, i32
  }
  func.func @transform_2(%arg0: i32) -> (i32, i32) {
    %c0_i32 = arith.constant 0 : i32
    %c0_i32_0 = arith.constant 0 : i32
    %c0_i32_1 = arith.constant 0 : i32
    return %c0_i32, %c0_i32_0 : i32, i32
  }
  func.func @transform_3(%arg0: i32) -> (i32, i32) {
    %c0_i32 = arith.constant 0 : i32
    %c0_i32_0 = arith.constant 0 : i32
    %c0_i32_1 = arith.constant 0 : i32
    return %c0_i32, %c0_i32_0 : i32, i32
  }
  func.func @transform_4(%arg0: i32) -> (i32, i32) {
    %c0_i32 = arith.constant 0 : i32
    %c0_i32_0 = arith.constant 0 : i32
    %c0_i32_1 = arith.constant 0 : i32
    return %c0_i32, %c0_i32_0 : i32, i32
  }
  func.func @transform_5(%arg0: i32) -> (i32, i32) {
    %c0_i32 = arith.constant 0 : i32
    %c0_i32_0 = arith.constant 0 : i32
    %c0_i32_1 = arith.constant 0 : i32
    return %c0_i32, %c0_i32_0 : i32, i32
  }
  func.func @transform_6(%arg0: i32) -> (i32, i32) {
    %c0_i32 = arith.constant 0 : i32
    %c0_i32_0 = arith.constant 0 : i32
    %c0_i32_1 = arith.constant 0 : i32
    return %c0_i32, %c0_i32_0 : i32, i32
  }
  func.func @transform_7(%arg0: i32) -> (i32, i32) {
    %c0_i32 = arith.constant 0 : i32
    %c0_i32_0 = arith.constant 0 : i32
    return %arg0, %c0_i32 : i32, i32
  }
}

</mosaic_0001>

<bundles_post_ra>
// kernel: tpu_custom_call.1
= control target key start
LH: loop header
LB: loop body
LE: loop exit
PB: predicated region body
PF: predicated region fallthrough
CT: control target
= control target key end

     0   :  { %12 = vsyncpa [#allocation3], 0  ;;  %s803_s0 = inlined_call_operand.hbm [shape: f32[8,128], index: 0, kind: input, shape index: {}]   ;;  %s804_s1 = inlined_call_operand.hbm [shape: bf16[128,128], index: 1, kind: input, shape index: {}]   ;;  %s805_s2 = inlined_call_operand.vmem [shape: f32[1,128], index: 2, kind: input, shape index: {}]   ;;  %s806_s3 = inlined_call_operand.hbm [shape: bf16[128,128], index: 3, kind: input, shape index: {}]   ;;  %s807_s4 = inlined_call_operand.vmem [shape: f32[1,128], index: 4, kind: input, shape index: {}]   ;;  %s808_s5 = inlined_call_operand.hbm [shape: bf16[128,128], index: 5, kind: input, shape index: {}]   ;;  %s809_s6 = inlined_call_operand.vmem [shape: f32[1,128], index: 6, kind: input, shape index: {}]   ;;  %s810_s7 = inlined_call_operand.hbm [shape: f32[8,128], index: 7, kind: output, shape index: {}]  }
   0x1   :  { %13 = vsyncpa [#allocation6], 0 }
   0x2   :  { %14 = vsyncpa [#allocation9], 0 }
   0x3   :  { %15 = vsyncpa [#allocation4], 0  ;;  %s691_s24 = smov [#allocation5]  }
   0x4   :  { %s31_s25 = sshll.u32 %s691_s24, 4  ;;  %s32_s25 = int_to_ptr.vmem [resolvable:$true] %s31_s25 }
   0x5   :  { %s591_s26 = scalar_lea.vmem %s32_s25, 1024  ;;  %p596_p1 = scmp.lt.s32.totalorder %s32_s25, %s32_s25 }
   0x6   :  { %p592_p0 = scmp.ne.s32.totalorder %s32_s25, %s591_s26  ;;  %p597_p2 = scmp.lt.s32.totalorder %s591_s26, %s591_s26 }
   0x8   :  { %p598_p3 = por %p597_p2, %p596_p1 }
   0xa   :  { %p599_p4 = pnand %p598_p3, %p592_p0 }
   0xc   :  { %602 = shalt.err (!%p599_p4)
}
   0xd   :  { %s692_s27 = smov 64   ;;  %s693_s28 = smov 4  }
   0xe   :  { %37 = dma.hbm_to_vmem [thread:$0]  %s804_s1, 1024, %s32_s25, [#allocation6], %s692_s27, %s692_s27, %s693_s28  }
   0xf   :  { %s694_s8 = smov [#allocation2]   ;;  %s695_s10 = smov [#allocation7]  }
  0x10   :  { %s22_s9 = sshll.u32 %s694_s8, 4  ;;  %s45_s11 = sshll.u32 %s695_s10, 4  ;;  %s23_s9 = int_to_ptr.vmem [resolvable:$true] %s22_s9  ;;  %s46_s11 = int_to_ptr.vmem [resolvable:$true] %s45_s11 }
  0x11   :  { %s611_s12 = scalar_lea.vmem %s23_s9, 128  ;;  %p616_p6 = scmp.lt.s32.totalorder %s23_s9, %s23_s9 }
  0x12   :  { %p612_p5 = scmp.ne.s32.totalorder %s23_s9, %s611_s12  ;;  %p617_p7 = scmp.lt.s32.totalorder %s611_s12, %s611_s12 }
  0x14   :  { %p618_p8 = por %p617_p7, %p616_p6 }
  0x16   :  { %p619_p9 = pnand %p618_p8, %p612_p5 }
  0x18   :  { %622 = shalt.err (!%p619_p9)
}
  0x19   :  { %25 = dma.hbm_to_vmem [thread:$0]  %s803_s0, 128, %s23_s9, [#allocation3]  }
  0x1a   :  { %s631_s15 = scalar_lea.vmem %s46_s11, 1024  ;;  %p636_p11 = scmp.lt.s32.totalorder %s46_s11, %s46_s11 }
  0x1b   :  { %p632_p10 = scmp.ne.s32.totalorder %s46_s11, %s631_s15  ;;  %p637_p12 = scmp.lt.s32.totalorder %s631_s15, %s631_s15 }
  0x1d   :  { %p638_p13 = por %p637_p12, %p636_p11 }
  0x1f   :  { %p639_p0 = pnand %p638_p13, %p632_p10 }
  0x21   :  { %642 = shalt.err (!%p639_p0)
}
  0x22   :  { %51 = dma.hbm_to_vmem [thread:$0]  %s806_s3, 1024, %s46_s11, [#allocation6], %s692_s27, %s692_s27, %s693_s28  }
  0x23   :  { %s696_s17 = smov [#allocation8]  }
  0x24   :  { %s59_s18 = sshll.u32 %s696_s17, 4  ;;  %s60_s18 = int_to_ptr.vmem [resolvable:$true] %s59_s18 }
  0x25   :  { %s651_s19 = scalar_lea.vmem %s60_s18, 1024  ;;  %p656_p2 = scmp.lt.s32.totalorder %s60_s18, %s60_s18 }
  0x26   :  { %p652_p1 = scmp.ne.s32.totalorder %s60_s18, %s651_s19  ;;  %p657_p3 = scmp.lt.s32.totalorder %s651_s19, %s651_s19 }
  0x28   :  { %p658_p4 = por %p657_p3, %p656_p2 }
  0x2a   :  { %p659_p5 = pnand %p658_p4, %p652_p1 }
  0x2c   :  { %662 = shalt.err (!%p659_p5)
}
  0x2d   :  { %65 = dma.hbm_to_vmem [thread:$0]  %s808_s5, 1024, %s60_s18, [#allocation9], %s692_s27, %s692_s27, %s693_s28  }
  0x2e   :  { %683 = dma.done.wait [#allocation3], 128  }
  0x2f   :  { %684 = vsyncadd [#allocation3], 4294967168 }
  0x30   :  { %685 = dma.done.wait [#allocation6], 2048  }
  0x31   :  { %686 = vsyncadd [#allocation6], 4294965248 }
  0x32   :  { %687 = dma.done.wait [#allocation9], 1024  }
  0x33   :  { %688 = vsyncadd [#allocation9], 4294966272  ;;  %v697_v0 = vmov 0.0   ;;  %vm698_vm0 = vmmov 0   ;;  %v559_v1 = vld [vmem:[#allocation5 + $0x38] sm:$0xff]   ;;  %v560_v2 = vld [vmem:[#allocation5 + $0x30] sm:$0xff]  }
  0x34   :  { %490 = vmatprep.subr.bf16.mxu0 %v697_v0  ;;  %506 = vmatprep.mubr.msk.bf16.mxu0 %vm698_vm0, %v697_v0  ;;  %v561_v3 = vld [vmem:[#allocation5 + $0x28] sm:$0xff]   ;;  %v567_v4 = vld [vmem:[#allocation7 + $0x38] sm:$0xff]   ;;  %v562_v5 = vld [vmem:[#allocation5 + $0x20] sm:$0xff]   ;;  %s699_s24 = smov [#allocation10]  }
  0x35   :  { %510 = vmatprep.subr.bf16.mxu1 %v697_v0  ;;  %526 = vmatprep.mubr.msk.bf16.mxu1 %vm698_vm0, %v697_v0  ;;  %v568_v6 = vld [vmem:[#allocation7 + $0x30] sm:$0xff]   ;;  %v563_v7 = vld [vmem:[#allocation5 + $0x18] sm:$0xff]   ;;  %v569_v8 = vld [vmem:[#allocation7 + $0x28] sm:$0xff]   ;;  %s425_s25 = sshll.u32 %s699_s24, 4  ;;  %s426_s25 = int_to_ptr.vmem [resolvable:$true] %s425_s25 }
  0x36   :  { %491 = vmatpush3.bf16.msra.mxu0 %v559_v1  ;;  %511 = vmatpush3.bf16.msra.mxu1 %v567_v4  ;;  %v564_v9 = vld [vmem:[#allocation5 + $0x10] sm:$0xff]   ;;  %v570_v10 = vld [vmem:[#allocation7 + $0x20] sm:$0xff]   ;;  %v565_v11 = vld [vmem:[#allocation5 + $0x8] sm:$0xff]   ;;  %p668_p7 = scmp.lt.s32.totalorder %s426_s25, %s426_s25 }
  0x37   :  { %492 = vmatprep.subr.bf16.mxu0 %v697_v0  ;;  %512 = vmatprep.subr.bf16.mxu1 %v697_v0  ;;  %v571_v12 = vld [vmem:[#allocation7 + $0x18] sm:$0xff]   ;;  %v566_v13 = vld [vmem:[#allocation5] sm:$0xff]   ;;  %v572_v15 = vld [vmem:[#allocation7 + $0x10] sm:$0xff]  }
  0x38   :  { %v81_v14 = vld [vmem:[#allocation2] sm:$0xff]  ;;  %v573_v17 = vld [vmem:[#allocation7 + $0x8] sm:$0xff]   ;;  %v574_v18 = vld [vmem:[#allocation7] sm:$0xff]  }
  0x39   :  { %v82_v16 = vpack.c.bf16 %v81_v14, %v81_v14  ;;  %v575_v19 = vld [vmem:[#allocation8 + $0x38] sm:$0xff]   ;;  %v576_v20 = vld [vmem:[#allocation8 + $0x30] sm:$0xff]   ;;  %v577_v21 = vld [vmem:[#allocation8 + $0x28] sm:$0xff]  }
  0x3a   :  { %493 = vmatpush3.bf16.msra.mxu0 %v560_v2  ;;  %513 = vmatpush3.bf16.msra.mxu1 %v568_v6  ;;  %v578_v22 = vld [vmem:[#allocation8 + $0x20] sm:$0xff]   ;;  %v579_v23 = vld [vmem:[#allocation8 + $0x18] sm:$0xff]   ;;  %v580_v24 = vld [vmem:[#allocation8 + $0x10] sm:$0xff]  }
  0x3b   :  { %494 = vmatprep.subr.bf16.mxu0 %v697_v0  ;;  %514 = vmatprep.subr.bf16.mxu1 %v697_v0  ;;  %v581_v25 = vld [vmem:[#allocation8 + $0x8] sm:$0xff]   ;;  %v436_v26 = vld [vmem:[%s805_s2] ss:$0 sm:$0xff]  ;;  %v582_v33 = vld [vmem:[#allocation8] sm:$0xff]  }
  0x3c   :  { %v445_v34 = vld [vmem:[%s807_s4] ss:$0 sm:$0xff]  ;;  %s663_s4 = scalar_lea.vmem %s426_s25, 128 }
  0x3d   :  { %v454_v41 = vld [vmem:[%s809_s6] ss:$0 sm:$0xff]  ;;  %p664_p6 = scmp.ne.s32.totalorder %s426_s25, %s663_s4  ;;  %p669_p8 = scmp.lt.s32.totalorder %s663_s4, %s663_s4 }
  0x3e   :  { %495 = vmatpush3.bf16.msra.mxu0 %v561_v3  ;;  %515 = vmatpush3.bf16.msra.mxu1 %v569_v8 }
  0x3f   :  { %496 = vmatprep.subr.bf16.mxu0 %v697_v0  ;;  %516 = vmatprep.subr.bf16.mxu1 %v697_v0  ;;  %p670_p9 = por %p669_p8, %p668_p7 }
  0x41   :  { %p671_p10 = pnand %p670_p9, %p664_p6 }
  0x42   :  { %497 = vmatpush3.bf16.msra.mxu0 %v562_v5  ;;  %517 = vmatpush3.bf16.msra.mxu1 %v570_v10 }
  0x43   :  { %498 = vmatprep.subr.bf16.mxu0 %v697_v0  ;;  %518 = vmatprep.subr.bf16.mxu1 %v697_v0 }
  0x46   :  { %499 = vmatpush3.bf16.msra.mxu0 %v563_v7  ;;  %519 = vmatpush3.bf16.msra.mxu1 %v571_v12 }
  0x47   :  { %500 = vmatprep.subr.bf16.mxu0 %v697_v0  ;;  %520 = vmatprep.subr.bf16.mxu1 %v697_v0 }
  0x4a   :  { %501 = vmatpush3.bf16.msra.mxu0 %v564_v9  ;;  %521 = vmatpush3.bf16.msra.mxu1 %v572_v15 }
  0x4b   :  { %502 = vmatprep.subr.bf16.mxu0 %v697_v0  ;;  %522 = vmatprep.subr.bf16.mxu1 %v697_v0 }
  0x4e   :  { %503 = vmatpush3.bf16.msra.mxu0 %v565_v11  ;;  %523 = vmatpush3.bf16.msra.mxu1 %v573_v17 }
  0x4f   :  { %504 = vmatprep.subr.bf16.mxu0 %v697_v0  ;;  %524 = vmatprep.subr.bf16.mxu1 %v697_v0 }
  0x52   :  { %505 = vmatpush3.bf16.msra.mxu0 %v566_v13  ;;  %525 = vmatpush3.bf16.msra.mxu1 %v574_v18 }
  0x53   :  { %530 = vmatprep.subr.bf16.mxu0 %v697_v0 }
  0x55   :  { %507 = vmatmul.mubr.bf16.vlgmr.msra.gmra.mxu0 %v82_v16 }
  0x56   :  { %546 = vmatprep.mubr.msk.bf16.mxu0 %vm698_vm0, %v697_v0  ;;  %531 = vmatpush3.bf16.msra.mxu0 %v575_v19 }
  0x57   :  { %532 = vmatprep.subr.bf16.mxu0 %v697_v0 }
  0x5a   :  { %533 = vmatpush3.bf16.msra.mxu0 %v576_v20 }
  0x5b   :  { %534 = vmatprep.subr.bf16.mxu0 %v697_v0 }
  0x5e   :  { %535 = vmatpush3.bf16.msra.mxu0 %v577_v21 }
  0x5f   :  { %536 = vmatprep.subr.bf16.mxu0 %v697_v0 }
  0x62   :  { %537 = vmatpush3.bf16.msra.mxu0 %v578_v22 }
  0x63   :  { %538 = vmatprep.subr.bf16.mxu0 %v697_v0 }
  0x66   :  { %539 = vmatpush3.bf16.msra.mxu0 %v579_v23 }
  0x67   :  { %540 = vmatprep.subr.bf16.mxu0 %v697_v0 }
  0x6a   :  { %541 = vmatpush3.bf16.msra.mxu0 %v580_v24 }
  0x6b   :  { %542 = vmatprep.subr.bf16.mxu0 %v697_v0 }
  0x6e   :  { %543 = vmatpush3.bf16.msra.mxu0 %v581_v25 }
  0x6f   :  { %544 = vmatprep.subr.bf16.mxu0 %v697_v0 }
  0x72   :  { %545 = vmatpush3.bf16.msra.mxu0 %v582_v33 }
 0x115   :  { %v188_v27 = vpop.f32.mrf.mxu0 }
 0x116   :  { %v189_v28 = vadd.f32 %v436_v26, %v188_v27 }
 0x117   :  { %v508_v29 = vpop.f32.mrf.mxu0 }
 0x118   :  { %v194_v30 = vpack.c.bf16 %v189_v28, %v189_v28 }
 0x119   :  { %v191_v31 = vpop.f32.mrf.mxu0 }
 0x11a   :  { %527 = vmatmul.mubr.bf16.vlgmr.msra.gmra.mxu1 %v194_v30 }
 0x11b   :  { %v509_v32 = vpop.f32.mrf.mxu0 }
 0x1da   :  { %v300_v35 = vpop.f32.mrf.mxu1 }
 0x1db   :  { %v301_v36 = vadd.f32 %v445_v34, %v300_v35 }
 0x1dc   :  { %v528_v37 = vpop.f32.mrf.mxu1 }
 0x1dd   :  { %v306_v38 = vpack.c.bf16 %v301_v36, %v301_v36 }
 0x1de   :  { %v303_v39 = vpop.f32.mrf.mxu1 }
 0x1df   :  { %547 = vmatmul.mubr.bf16.vlgmr.msra.gmra.mxu0 %v306_v38 }
 0x1e0   :  { %v529_v40 = vpop.f32.mrf.mxu1 }
 0x29f   :  { %v412_v42 = vpop.f32.mrf.mxu0 }
 0x2a0   :  { %v413_v43 = vadd.f32 %v454_v41, %v412_v42 }
 0x2a1   :  { %v548_v44 = vpop.f32.mrf.mxu0 }
 0x2a2   :  { %418 = vst [vmem:[#allocation10] sm:$0xff] %v413_v43 }
 0x2a3   :  { %v415_v45 = vpop.f32.mrf.mxu0 }
 0x2a4   :  { %674 = shalt.err (!%p671_p10)
}
 0x2a5   :  { %428 = dma.vmem_to_hbm [thread:$0]  %s426_s25, 128, %s810_s7, [#allocation4]   ;;  %v549_v46 = vpop.f32.mrf.mxu0 }
 0x2a6   :  { %689 = dma.done.wait [#allocation4], 128  }
 0x2a7   :  { %690 = vsyncadd [#allocation4], 4294967168 }
 0x2a8   :  { %432 = vsyncpa [#allocation3], 1 }
 0x2a9   :  { %433 = vsyncpa [#allocation6], 1 }
 0x2aa   :  { %434 = vsyncpa [#allocation9], 1 }
 0x2ab   :  { %435 = vsyncpa [#allocation4], 1 }

</bundles_post_ra>
